<compile_context>
chip_gen: v6e
topology: v6e:2x2x1
jax: 0.10.0
libtpu: 0.0.40
codegen_flags: <defaults>
</compile_context>

<pallas_src>
import functools

import jax
import jax.numpy as jnp
from jax.experimental import pallas as pl
from jax.experimental.pallas import tpu as pltpu


def _adain_kernel(x_ref, scale_ref, shift_ref, o_ref, *, eps: float, L: int):
    # Upcast to f32 for the statistics (no-op for f32 inputs; required for bf16).
    x = x_ref[...].astype(jnp.float32)                      # (rows, L)
    mean = jnp.mean(x, axis=-1, keepdims=True)              # (rows, 1)
    diff = x - mean
    denom = max(L - 1, 1)                                   # guard L == 1
    var = jnp.sum(diff * diff, axis=-1, keepdims=True) * (1.0 / denom)
    std = jnp.sqrt(var) + eps                               # eps added to std (torch)
    # Exact reciprocal on the small per-row stats tensor (keeps numerics tight),
    # folded with scale so the big-tile work is a single fused mul-add.
    m = (1.0 / std) * scale_ref[...].astype(jnp.float32)    # (rows, 1)
    y = diff * m + shift_ref[...].astype(jnp.float32)       # (rows, L)
    o_ref[...] = y.astype(o_ref.dtype)


def adain(x, scale, shift, *, eps: float = 1e-5, target_block_bytes: int = 2 << 20):
    """x: (B, C, L); scale, shift: (1, C, 1). Returns (B, C, L)."""
    B, C, L = x.shape
    R = B * C

    # Flatten to (rows, L): lane axis = L, sublane axis = rows (dense packing).
    x2 = x.reshape(R, L)
    scale2 = jnp.broadcast_to(scale, (B, C, 1)).reshape(R, 1)
    shift2 = jnp.broadcast_to(shift, (B, C, 1)).reshape(R, 1)

    # Row tile: multiple of 8 sublanes, ~target_block_bytes of f32 per block,
    # or the full row count if it already fits.
    row_bytes = L * 4  # compute happens in f32
    rows = max(8, target_block_bytes // row_bytes)
    rows = (rows // 8) * 8
    if rows >= R:
        rows = R  # full-extent block (always legal, even if R < 8)

    grid = (pl.cdiv(R, rows),)

    kernel = functools.partial(_adain_kernel, eps=eps, L=L)

    itemsize = jnp.dtype(x.dtype).itemsize
    cost = pl.CostEstimate(
        flops=7 * R * L,
        transcendentals=R,
        bytes_accessed=2 * R * L * itemsize + 2 * R * jnp.dtype(scale.dtype).itemsize,
    )

    out2 = pl.pallas_call(
        kernel,
        out_shape=jax.ShapeDtypeStruct((R, L), x.dtype),
        grid_spec=pltpu.PrefetchScalarGridSpec(
            num_scalar_prefetch=0,
            grid=grid,
            in_specs=[
                pl.BlockSpec((rows, L), lambda i: (i, 0)),
                pl.BlockSpec((rows, 1), lambda i: (i, 0)),
                pl.BlockSpec((rows, 1), lambda i: (i, 0)),
            ],
            out_specs=pl.BlockSpec((rows, L), lambda i: (i, 0)),
        ),
        compiler_params=pltpu.CompilerParams(
            dimension_semantics=("parallel",),
            vmem_limit_bytes=32 * 1024 * 1024,
        ),
        cost_estimate=cost,
    )(x2, scale2, shift2)

    return out2.reshape(B, C, L)


def adain_ref(x, scale, shift, eps=1e-5):
    mean = jnp.mean(x, axis=-1, keepdims=True)
    var = jnp.sum((x - mean) ** 2, axis=-1, keepdims=True) / max(x.shape[-1] - 1, 1)
    std = jnp.sqrt(var) + eps
    return (x - mean) / std * scale + shift


if __name__ == "__main__":
    key = jax.random.PRNGKey(0)

    # Small shapes implied by the module: (batch=2, channels=4, length=16).
    B, C, L = 2, 4, 16
    x = jax.random.normal(key, (B, C, L), dtype=jnp.float32)
    scale = jnp.ones((1, C, 1), dtype=jnp.float32)   # nn.Parameter default init
    shift = jnp.zeros((1, C, 1), dtype=jnp.float32)

    out = adain(x, scale, shift, eps=1e-5)
    out = jax.block_until_ready(out)
    ref = adain_ref(x, scale, shift, eps=1e-5)
    assert jnp.allclose(out, ref, atol=1e-5, rtol=1e-5), "mismatch vs reference (small)"

    # Second case exercising a multi-step tiled grid (rows tile < total rows).
    B2, C2, L2 = 4, 16, 256
    key2 = jax.random.PRNGKey(0)
    x2 = jax.random.normal(key2, (B2, C2, L2), dtype=jnp.float32)
    scale2 = jnp.ones((1, C2, 1), dtype=jnp.float32)
    shift2 = jnp.zeros((1, C2, 1), dtype=jnp.float32)

    out2 = adain(x2, scale2, shift2, eps=1e-5, target_block_bytes=16 * 1024)
    out2 = jax.block_until_ready(out2)
    ref2 = adain_ref(x2, scale2, shift2, eps=1e-5)
    assert jnp.allclose(out2, ref2, atol=1e-5, rtol=1e-5), "mismatch vs reference (tiled)"

    print("KERNEL_OK")
</pallas_src>

<mosaic_0001>
module attributes {stable_mosaic.version = 11 : i64} {
  func.func @_adain_kernel(%arg0: i32, %arg1: memref<8x16xf32, #tpu.memory_space<vmem>>, %arg2: memref<8x1xf32, #tpu.memory_space<vmem>>, %arg3: memref<8x1xf32, #tpu.memory_space<vmem>>, %arg4: memref<8x16xf32, #tpu.memory_space<vmem>>) attributes {dimension_semantics = [#tpu.dimension_semantics<parallel>], iteration_bounds = array<i64: 1>, scalar_prefetch = 0 : i64, scratch_operands = 0 : i64, tpu.core_type = #tpu.core_type<tc>, window_params = [{transform_indices = @transform_0, window_bounds = array<i64: 8, 16>}, {transform_indices = @transform_1, window_bounds = array<i64: 8, 1>}, {transform_indices = @transform_2, window_bounds = array<i64: 8, 1>}, {transform_indices = @transform_3, window_bounds = array<i64: 8, 16>}]} {
    %c0 = arith.constant 0 : index
    %c0_0 = arith.constant 0 : index
    %0 = vector.load %arg1[%c0, %c0_0] : memref<8x16xf32, #tpu.memory_space<vmem>>, vector<8x16xf32>
    %cst = arith.constant dense<0.000000e+00> : vector<8xf32>
    %1 = vector.multi_reduction <add>, %0, %cst [1] : vector<8x16xf32> to vector<8xf32>
    %2 = vector.shape_cast %1 : vector<8xf32> to vector<8x1xf32>
    %cst_1 = arith.constant 1.600000e+01 : f32
    %3 = vector.broadcast %cst_1 : f32 to vector<8x1xf32>
    %4 = arith.divf %2, %3 : vector<8x1xf32>
    %5 = vector.broadcast %4 : vector<8x1xf32> to vector<8x16xf32>
    %6 = arith.subf %0, %5 : vector<8x16xf32>
    %7 = arith.mulf %6, %6 : vector<8x16xf32>
    %cst_2 = arith.constant dense<0.000000e+00> : vector<8xf32>
    %8 = vector.multi_reduction <add>, %7, %cst_2 [1] : vector<8x16xf32> to vector<8xf32>
    %9 = vector.shape_cast %8 : vector<8xf32> to vector<8x1xf32>
    %cst_3 = arith.constant 0.0666666701 : f32
    %10 = vector.broadcast %cst_3 : f32 to vector<8x1xf32>
    %11 = arith.mulf %9, %10 : vector<8x1xf32>
    %12 = math.sqrt %11 : vector<8x1xf32>
    %cst_4 = arith.constant 9.99999974E-6 : f32
    %13 = vector.broadcast %cst_4 : f32 to vector<8x1xf32>
    %14 = arith.addf %12, %13 : vector<8x1xf32>
    %cst_5 = arith.constant 1.000000e+00 : f32
    %15 = vector.broadcast %cst_5 : f32 to vector<8x1xf32>
    %16 = arith.divf %15, %14 : vector<8x1xf32>
    %c0_6 = arith.constant 0 : index
    %c0_7 = arith.constant 0 : index
    %17 = vector.load %arg2[%c0_6, %c0_7] : memref<8x1xf32, #tpu.memory_space<vmem>>, vector<8x1xf32>
    %18 = arith.mulf %16, %17 : vector<8x1xf32>
    %19 = vector.broadcast %18 : vector<8x1xf32> to vector<8x16xf32>
    %20 = arith.mulf %6, %19 : vector<8x16xf32>
    %c0_8 = arith.constant 0 : index
    %c0_9 = arith.constant 0 : index
    %21 = vector.load %arg3[%c0_8, %c0_9] : memref<8x1xf32, #tpu.memory_space<vmem>>, vector<8x1xf32>
    %22 = vector.broadcast %21 : vector<8x1xf32> to vector<8x16xf32>
    %23 = arith.addf %20, %22 : vector<8x16xf32>
    %c0_10 = arith.constant 0 : index
    %c0_11 = arith.constant 0 : index
    %24 = vector.load %arg4[%c0_10, %c0_11] : memref<8x16xf32, #tpu.memory_space<vmem>>, vector<8x16xf32>
    tpu.vector_store %arg4[%c0_10, %c0_11], %23 {strides = array<i32>} : memref<8x16xf32, #tpu.memory_space<vmem>>, vector<8x16xf32>,
    return
  }
  func.func @transform_0(%arg0: i32) -> (i32, i32) {
    %c0_i32 = arith.constant 0 : i32
    %c0_i32_0 = arith.constant 0 : i32
    return %arg0, %c0_i32 : i32, i32
  }
  func.func @transform_1(%arg0: i32) -> (i32, i32) {
    %c0_i32 = arith.constant 0 : i32
    %c0_i32_0 = arith.constant 0 : i32
    return %arg0, %c0_i32 : i32, i32
  }
  func.func @transform_2(%arg0: i32) -> (i32, i32) {
    %c0_i32 = arith.constant 0 : i32
    %c0_i32_0 = arith.constant 0 : i32
    return %arg0, %c0_i32 : i32, i32
  }
  func.func @transform_3(%arg0: i32) -> (i32, i32) {
    %c0_i32 = arith.constant 0 : i32
    %c0_i32_0 = arith.constant 0 : i32
    return %arg0, %c0_i32 : i32, i32
  }
}

</mosaic_0001>

<bundles_post_ra>
// kernel: tpu_custom_call.1
= control target key start
LH: loop header
LB: loop body
LE: loop exit
PB: predicated region body
PF: predicated region fallthrough
CT: control target
= control target key end

     0   :  { %vm16_vm0 = vcmask 130048   ;;  %s135_s0 = inlined_call_operand.vmem [shape: f32[8,16], index: 0, kind: input, shape index: {}]   ;;  %s136_s1 = inlined_call_operand.vmem [shape: f32[8,1], index: 1, kind: input, shape index: {}]   ;;  %s137_s2 = inlined_call_operand.vmem [shape: f32[8,1], index: 2, kind: input, shape index: {}]   ;;  %s138_s3 = inlined_call_operand.hbm [shape: f32[8,16], index: 3, kind: output, shape index: {}]  }
   0x1   :  { %v15_v0 = vld [vmem:[%s135_s0] sm:$0xff] }
   0x2   :  { %8 = vsyncpa [#allocation3], 0  ;;  %v17_v1 = vsel %vm16_vm0, %v15_v0, 0.0  ;;  %v98_v7 = vmov 0   ;;  %v38_v16 = vld [vmem:[%s136_s1] sm:$0xff]  ;;  %s99_s17 = smov [#allocation2]  }
   0x3   :  { %18 = vadd.xlane.f32.xlu0 %v17_v1  ;;  %70 = vset.pattern.permute.xlu1 %v98_v7  ;;  %v46_v19 = vld [vmem:[%s137_s2] sm:$0xff]  ;;  %s60_s18 = sshll.u32 %s99_s17, 4  ;;  %s61_s18 = int_to_ptr.vmem [resolvable:$true] %s60_s18 }
   0x4   :  { %71 = vset.pattern.permute.xlu0 %v98_v7  ;;  %s76_s19 = scalar_lea.vmem %s61_s18, 128  ;;  %p81_p1 = scmp.lt.s32.totalorder %s61_s18, %s61_s18 }
   0x5   :  { %p77_p0 = scmp.ne.s32.totalorder %s61_s18, %s76_s19  ;;  %p82_p2 = scmp.lt.s32.totalorder %s76_s19, %s76_s19 }
   0x7   :  { %p83_p3 = por %p82_p2, %p81_p1 }
   0x9   :  { %p84_p4 = pnand %p83_p3, %p77_p0 }
  0x8c   :  { %v19_v2 = vpop.xlane.xlu0 %18 }
  0x8d   :  { %v21_v3 = vmul.f32 0.0625, %v19_v2 }
  0x8f   :  { %v22_v4 = vsub.f32 %v15_v0, %v21_v3 }
  0x91   :  { %v23_v5 = vmul.f32 %v22_v4, %v22_v4 }
  0x93   :  { %v24_v6 = vsel %vm16_vm0, %v23_v5, 0.0 }
  0x94   :  { %25 = vadd.xlane.f32.xlu0 %v24_v6 }
 0x11d   :  { %v26_v8 = vpop.xlane.xlu0 %25 }
 0x11e   :  { %v27_v9 = vmul.f32 0.06666667, %v26_v8 }
 0x120   :  { %72 = vrsqrt.f32 %v27_v9  ;;  %vm30_vm1 = vcmp.eq.f32.partialorder %v27_v9, inf  ;;  %v33_v12 = vand.u32 2147483648, %v27_v9  ;;  %vm32_vm2 = vcmp.eq.f32.partialorder %v27_v9, 0.0 }
 0x12d   :  { %v73_v10 = vpop.eup %72 }
 0x12e   :  { %v29_v11 = vmul.f32 %v73_v10, %v27_v9 }
 0x130   :  { %v31_v13 = vsel %vm30_vm1, %v27_v9, %v29_v11 }
 0x131   :  { %v34_v14 = vsel %vm32_vm2, %v33_v12, %v31_v13 }
 0x132   :  { %v35_v15 = vadd.f32 1e-05, %v34_v14 }
 0x134   :  { %74 = vrcp.f32 %v35_v15 }
 0x141   :  { %v75_v17 = vpop.eup %74 }
 0x142   :  { %v39_v18 = vmul.f32 %v75_v17, %v38_v16 }
 0x144   :  { %42 = vperm.xlu1 %70, %v39_v18  }
 0x148   :  { %49 = vperm.xlu1 %70, %v46_v19  }
 0x1bf   :  { %v43_v20 = vpop.permute.xlu1 %42 }
 0x1c0   :  { %v45_v21 = vmul.f32 %v43_v20, %v22_v4 }
 0x1c3   :  { %v50_v22 = vpop.permute.xlu1 %49 }
 0x1c4   :  { %v52_v23 = vadd.f32 %v50_v22, %v45_v21 }
 0x1c6   :  { %53 = vst.msk [vmem:[#allocation2] sm:$0xff] %vm16_vm0, %v52_v23 }
 0x1c7   :  { %87 = shalt.err (!%p84_p4)
}
 0x1c8   :  { %63 = dma.vmem_to_hbm [thread:$0]  %s61_s18, 128, %s138_s3, [#allocation3]  }
 0x1c9   :  { %96 = dma.done.wait [#allocation3], 128  }
 0x1ca   :  { %97 = vsyncadd [#allocation3], 4294967168 }
 0x1cb   :  { %67 = vsyncpa [#allocation3], 1 }

</bundles_post_ra>
